<compile_context>
chip_gen: v6e
topology: v6e:2x2x1
jax: 0.10.0
libtpu: 0.0.40
codegen_flags: <defaults>
</compile_context>

<pallas_src>
import functools

import jax
import jax.numpy as jnp
from jax.experimental import pallas as pl
from jax.experimental.pallas import tpu as pltpu


def _dw_prelu_stats_kernel(xc_ref, xh_ref, wdw_ref, a_ref, y_ref, st_ref,
                           *, dilation, halo, l_out, tile_l):
    """Depthwise conv + PReLU on one time tile; emits per-channel partial BN sums."""
    xc = xc_ref[...]                      # (N, C, W)    current tile (left pad built in)
    wdw = wdw_ref[...]                    # (C, K)       depthwise weights
    a = a_ref[0]                          # PReLU slope (scalar, SMEM)
    K = wdw.shape[1]
    W = xc.shape[-1]

    # Window = current tile + narrow lane-aligned halo block (head lanes starting at
    # the next tile). The concat is lane-aligned; only the per-tap slices below are
    # unaligned.
    if halo > 0:
        xx = jnp.concatenate([xc, xh_ref[...]], axis=-1)      # (N, C, W + head)
    else:
        xx = xc

    # Depthwise conv: tap 0 is lane-aligned -> use it to initialize (no zeros fill).
    y = xc * wdw[:, 0][None, :, None]
    for k in range(1, K):                 # K is tiny & static -> unrolled
        off = k * dilation
        y = y + xx[:, :, off:off + W] * wdw[:, k][None, :, None]

    # PReLU (single shared learnable slope, nn.PReLU() default).
    y = jnp.where(y > 0, y, a * y)

    # Zero lanes past the true output length so they cannot pollute the BN stats
    # (compile-time decision: only emitted when the tile does not divide L_out).
    if l_out % tile_l != 0:
        lane = jax.lax.broadcasted_iota(jnp.int32, y.shape, 2)
        y = jnp.where(pl.program_id(0) * tile_l + lane < l_out, y, 0.0)

    # Intermediate activations go back to HBM in bf16 (halves write + re-read bytes).
    y_ref[...] = y.astype(y_ref.dtype)

    # Single-pass BN statistics in f32 (computed before the bf16 cast): one merged
    # lane-wider store of [sum(y) | sum(y*y)] instead of two separate (N, C) stores.
    st_ref[0] = jnp.concatenate([jnp.sum(y, axis=-1), jnp.sum(y * y, axis=-1)], axis=-1)


def _pointwise_kernel(y_ref, wps_ref, bias_ref, o_ref, *, n_batch):
    """Pointwise 1x1 conv with the BatchNorm affine folded into weights/bias."""
    w = wps_ref[...]                                  # (C_out, C)  bf16 folded weights
    b = bias_ref[...]                                 # (C_out, 1)  f32 folded bias
    for n in range(n_batch):                          # static, small -> unrolled
        out = jnp.dot(w, y_ref[n],                    # (C_out, W) on the MXU, f32 acc
                      preferred_element_type=jnp.float32)
        o_ref[n] = out + b


def depthwise_separable_conv(x, w_dw, prelu_a, gamma, beta, w_pw,
                             *, stride=1, padding=0, dilation=1, causal=False,
                             eps=1e-5, tile_l=None):
    """x: (N, C_in, L) -> (N, C_out, L_out) float32. Training-mode BatchNorm semantics."""
    assert stride == 1, "this kernel implements stride=1 (the TCN use case)"
    N, C, L = x.shape
    C_out = w_pw.shape[0]
    K = w_dw.shape[-1]
    halo = dilation * (K - 1)

    L_conv = L + 2 * padding - halo
    L_out = L_conv - (padding if causal else 0)     # Chomp1d(padding) for the causal case
    assert L_out > 0

    # Lane-aligned halo width: what the "next tile" stream actually needs.
    head = pl.cdiv(halo, 128) * 128 if halo > 0 else 128

    # Time-tile (lane) size: as large as the VMEM budget allows (cap 1024), a multiple
    # of 128 and of `head` (so the halo block offset (t+1)*W is block-index aligned).
    if tile_l is None:
        budget = 28 << 20                                    # fits every generation
        per_lane_p1 = 2 * (N * C * 4 + N * C * 2)            # xc f32 + y bf16, 2-deep
        per_lane_p2 = 2 * (N * C * 2 + N * C_out * 4)        # y bf16 in + out f32, 2-deep
        cap = max(128, (budget // max(per_lane_p1, per_lane_p2)) // 128 * 128)
        tile_l = min(1024, cap, pl.cdiv(L_out, 128) * 128)
    W = max(int(tile_l), head)
    W = pl.cdiv(W, head) * head
    assert W % 128 == 0
    T = pl.cdiv(L_out, W)
    L_pad_out = T * W
    w_per_head = W // head

    # Padded input laid out so output position j only needs X[j .. j+halo]:
    #   X = [padding zeros | x | zeros], length T*W + head so the narrow halo block
    #   after the last tile always exists (right halo lanes are zeros).
    # TODO(synk): the host-side pad costs one extra HBM copy of x; replacing it with
    # in-kernel edge masking would help most on v5e (lowest HBM bandwidth).
    Lp = T * W + head
    x_pad = jnp.pad(x.astype(jnp.float32),
                    ((0, 0), (0, 0), (padding, Lp - padding - L)))

    wdw2 = w_dw.reshape(C, K).astype(jnp.float32)
    wpw2 = w_pw.reshape(C_out, C).astype(jnp.float32)
    a = jnp.asarray(prelu_a, jnp.float32).reshape(1)

    # Explicit VMEM limit: big tiles on v5e (16 MiB scoped default) need it; 48 MiB
    # stays below v7x's 64 MiB physical VMEM.
    vmem_p1 = 2 * (N * C * W * 4 + N * C * head * 4 + N * C * W * 2 + N * 2 * C * 4)
    vmem_p2 = 2 * (N * C * W * 2 + N * C_out * W * 4)
    vmem_limit = int(min(48 << 20, max(32 << 20, 4 * max(vmem_p1, vmem_p2))))

    # ---- Phase 1: depthwise conv + PReLU + single-pass BN partial stats ----
    dw_kernel = functools.partial(_dw_prelu_stats_kernel, dilation=dilation,
                                  halo=halo, l_out=L_out, tile_l=W)
    y_h, stats = pl.pallas_call(
        dw_kernel,
        grid=(T,),
        out_shape=(jax.ShapeDtypeStruct((N, C, L_pad_out), jnp.bfloat16),
                   jax.ShapeDtypeStruct((T, N, 2 * C), jnp.float32)),
        in_specs=[
            pl.BlockSpec((N, C, W), lambda t: (0, 0, t)),            # current time tile
            pl.BlockSpec((N, C, head),                               # narrow halo block
                         lambda t: (0, 0, (t + 1) * w_per_head)),
            pl.BlockSpec((C, K), lambda t: (0, 0)),                  # depthwise weights
            pl.BlockSpec(memory_space=pltpu.MemorySpace.SMEM),       # PReLU slope (scalar)
        ],
        out_specs=(
            pl.BlockSpec((N, C, W), lambda t: (0, 0, t)),            # y = PReLU(dw(x)), bf16
            pl.BlockSpec((1, N, 2 * C), lambda t: (t, 0, 0)),        # per-tile BN partials
        ),
        compiler_params=pltpu.CompilerParams(
            dimension_semantics=("parallel",), vmem_limit_bytes=vmem_limit),
    )(x_pad, x_pad, wdw2, a)

    # ---- Host glue (tiny): finish BN stats, fold the affine into the pointwise conv ----
    cnt = jnp.float32(N * L_out)
    s = jnp.sum(stats[:, :, :C], axis=(0, 1))            # (C,)  sum(y)
    ss = jnp.sum(stats[:, :, C:], axis=(0, 1))           # (C,)  sum(y*y)
    mean = s / cnt
    var = ss / cnt - mean * mean                          # biased (training-mode) variance
    inv_std = jax.lax.rsqrt(var + eps)
    scale = gamma.astype(jnp.float32) * inv_std           # (C,)
    shift = beta.astype(jnp.float32) - mean * scale       # (C,)
    wps = (wpw2 * scale[None, :]).astype(jnp.bfloat16)    # (C_out, C)  folded bf16 weights
    bias = (wpw2 @ shift).reshape(C_out, 1)               # (C_out, 1)  folded f32 bias

    # ---- Phase 2: pointwise 1x1 conv, N lane-dense MXU matmuls per time tile ----
    pw_kernel = functools.partial(_pointwise_kernel, n_batch=N)
    out_pad = pl.pallas_call(
        pw_kernel,
        grid=(T,),
        out_shape=jax.ShapeDtypeStruct((N, C_out, L_pad_out), jnp.float32),
        in_specs=[
            pl.BlockSpec((N, C, W), lambda t: (0, 0, t)),
            pl.BlockSpec((C_out, C), lambda t: (0, 0)),
            pl.BlockSpec((C_out, 1), lambda t: (0, 0)),
        ],
        out_specs=pl.BlockSpec((N, C_out, W), lambda t: (0, 0, t)),
        compiler_params=pltpu.CompilerParams(
            dimension_semantics=("parallel",), vmem_limit_bytes=vmem_limit),
    )(y_h, wps, bias)

    return out_pad if L_pad_out == L_out else out_pad[:, :, :L_out]


def _reference(x, w_dw, prelu_a, gamma, beta, w_pw,
               *, padding, dilation, causal, eps=1e-5):
    """Pure-JAX reference of the PyTorch forward (training-mode BN)."""
    N, C, L = x.shape
    K = w_dw.shape[-1]
    C_out = w_pw.shape[0]
    xp = jnp.pad(x.astype(jnp.float32), ((0, 0), (0, 0), (padding, padding)))
    L_conv = L + 2 * padding - dilation * (K - 1)
    wd = w_dw.reshape(C, K).astype(jnp.float32)
    y = jnp.zeros((N, C, L_conv), jnp.float32)
    for k in range(K):
        off = k * dilation
        y = y + xp[:, :, off:off + L_conv] * wd[:, k][None, :, None]
    if causal and padding > 0:
        y = y[:, :, :-padding]
    y = jnp.where(y > 0, y, prelu_a * y)
    mean = y.mean(axis=(0, 2), keepdims=True)
    var = ((y - mean) ** 2).mean(axis=(0, 2), keepdims=True)
    y = (y - mean) / jnp.sqrt(var + eps) * gamma.reshape(1, C, 1) + beta.reshape(1, C, 1)
    return jnp.einsum('oc,nct->not', w_pw.reshape(C_out, C).astype(jnp.float32), y)


if __name__ == "__main__":
    key = jax.random.PRNGKey(0)

    def run_case(idx, *, N, C_in, C_out, L, K, padding, dilation, causal, tile_l=None):
        kx, kd, kp, kg, kb = jax.random.split(jax.random.fold_in(key, idx), 5)
        x = jax.random.normal(kx, (N, C_in, L), jnp.float32)
        # Parameter shapes as in the PyTorch __init__:
        w_dw = 0.3 * jax.random.normal(kd, (C_in, 1, K), jnp.float32)      # depthwise weight
        w_pw = 0.3 * jax.random.normal(kp, (C_out, C_in, 1), jnp.float32)  # pointwise weight
        prelu_a = jnp.float32(0.25)                                        # nn.PReLU default
        gamma = 1.0 + 0.1 * jax.random.normal(kg, (C_in,), jnp.float32)    # BN weight
        beta = 0.1 * jax.random.normal(kb, (C_in,), jnp.float32)           # BN bias

        out = depthwise_separable_conv(
            x, w_dw, prelu_a, gamma, beta, w_pw,
            stride=1, padding=padding, dilation=dilation, causal=causal, tile_l=tile_l)
        out = jax.block_until_ready(out)

        ref = _reference(x, w_dw, prelu_a, gamma, beta, w_pw,
                         padding=padding, dilation=dilation, causal=causal)
        assert out.shape == ref.shape, (out.shape, ref.shape)
        # bf16 intermediate / bf16 folded matmul -> relaxed tolerance.
        assert jnp.allclose(out, ref, rtol=3e-2, atol=3e-2), f"mismatch in case {idx}"

    # 1) multi-tile time axis (3 tiles of 128), non-causal "same"-style padding
    run_case(0, N=2, C_in=8, C_out=16, L=384, K=3, padding=1, dilation=1,
             causal=False, tile_l=128)
    # 2) causal + dilated path (Chomp1d drops the trailing `padding` outputs)
    run_case(1, N=2, C_in=8, C_out=16, L=128, K=3, padding=4, dilation=2, causal=True)
    # 3) output length not a multiple of the tile (exercises tail masking for BN stats)
    run_case(2, N=2, C_in=8, C_out=16, L=100, K=3, padding=1, dilation=1, causal=False)

    print("KERNEL_OK")
</pallas_src>

<mosaic_0001>
module attributes {stable_mosaic.version = 11 : i64} {
  func.func @_dw_prelu_stats_kernel(%arg0: i32, %arg1: memref<2x8x128xf32, #tpu.memory_space<vmem>>, %arg2: memref<2x8x128xf32, #tpu.memory_space<vmem>>, %arg3: memref<8x3xf32, #tpu.memory_space<vmem>>, %arg4: memref<1xf32, #tpu.memory_space<smem>>, %arg5: memref<2x8x128xbf16, #tpu.memory_space<vmem>>, %arg6: memref<1x2x16xf32, #tpu.memory_space<vmem>>) attributes {dimension_semantics = [#tpu.dimension_semantics<parallel>], iteration_bounds = array<i64: 3>, scalar_prefetch = 0 : i64, scratch_operands = 0 : i64, tpu.core_type = #tpu.core_type<tc>, window_params = [{transform_indices = @transform_0, window_bounds = array<i64: 2, 8, 128>}, {transform_indices = @transform_1, window_bounds = array<i64: 2, 8, 128>}, {pipeline_mode = #tpu.pipeline_mode<synchronous>, transform_indices = @transform_2, window_bounds = array<i64: 8, 3>}, {transform_indices = @transform_3, window_bounds = array<i64: 1>}, {transform_indices = @transform_4, window_bounds = array<i64: 2, 8, 128>}, {transform_indices = @transform_5, window_bounds = array<i64: 1, 2, 16>}]} {
    %c0 = arith.constant 0 : index
    %c0_0 = arith.constant 0 : index
    %c0_1 = arith.constant 0 : index
    %0 = vector.load %arg1[%c0, %c0_0, %c0_1] : memref<2x8x128xf32, #tpu.memory_space<vmem>>, vector<2x8x128xf32>
    %c0_2 = arith.constant 0 : index
    %c0_3 = arith.constant 0 : index
    %1 = vector.load %arg3[%c0_2, %c0_3] : memref<8x3xf32, #tpu.memory_space<vmem>>, vector<8x3xf32>
    %c0_4 = arith.constant 0 : index
    %2 = memref.load %arg4[%c0_4] : memref<1xf32, #tpu.memory_space<smem>>
    %c0_5 = arith.constant 0 : index
    %c0_6 = arith.constant 0 : index
    %c0_7 = arith.constant 0 : index
    %3 = vector.load %arg2[%c0_5, %c0_6, %c0_7] : memref<2x8x128xf32, #tpu.memory_space<vmem>>, vector<2x8x128xf32>
    %4 = tpu.concatenate %0, %3 in 2 : vector<2x8x128xf32>, vector<2x8x128xf32> -> vector<2x8x256xf32>
    %5 = vector.extract_strided_slice %1 {offsets = [0, 0], sizes = [8, 1], strides = [1, 1]} : vector<8x3xf32> to vector<8x1xf32>
    %6 = vector.shape_cast %5 : vector<8x1xf32> to vector<8xf32>
    %7 = vector.shape_cast %6 : vector<8xf32> to vector<1x8x1xf32>
    %8 = vector.broadcast %7 : vector<1x8x1xf32> to vector<2x8x128xf32>
    %9 = arith.mulf %0, %8 : vector<2x8x128xf32>
    %10 = vector.extract_strided_slice %4 {offsets = [0, 0, 1], sizes = [2, 8, 128], strides = [1, 1, 1]} : vector<2x8x256xf32> to vector<2x8x128xf32>
    %11 = vector.extract_strided_slice %1 {offsets = [0, 1], sizes = [8, 1], strides = [1, 1]} : vector<8x3xf32> to vector<8x1xf32>
    %12 = vector.shape_cast %11 : vector<8x1xf32> to vector<8xf32>
    %13 = vector.shape_cast %12 : vector<8xf32> to vector<1x8x1xf32>
    %14 = vector.broadcast %13 : vector<1x8x1xf32> to vector<2x8x128xf32>
    %15 = arith.mulf %10, %14 : vector<2x8x128xf32>
    %16 = arith.addf %9, %15 : vector<2x8x128xf32>
    %17 = vector.extract_strided_slice %4 {offsets = [0, 0, 2], sizes = [2, 8, 128], strides = [1, 1, 1]} : vector<2x8x256xf32> to vector<2x8x128xf32>
    %18 = vector.extract_strided_slice %1 {offsets = [0, 2], sizes = [8, 1], strides = [1, 1]} : vector<8x3xf32> to vector<8x1xf32>
    %19 = vector.shape_cast %18 : vector<8x1xf32> to vector<8xf32>
    %20 = vector.shape_cast %19 : vector<8xf32> to vector<1x8x1xf32>
    %21 = vector.broadcast %20 : vector<1x8x1xf32> to vector<2x8x128xf32>
    %22 = arith.mulf %17, %21 : vector<2x8x128xf32>
    %23 = arith.addf %16, %22 : vector<2x8x128xf32>
    %cst = arith.constant 0.000000e+00 : f32
    %24 = vector.broadcast %cst : f32 to vector<2x8x128xf32>
    %25 = arith.cmpf ogt, %23, %24 : vector<2x8x128xf32>
    %26 = vector.broadcast %2 : f32 to vector<2x8x128xf32>
    %27 = arith.mulf %26, %23 : vector<2x8x128xf32>
    %28 = arith.select %25, %23, %27 : vector<2x8x128xi1>, vector<2x8x128xf32>
    %29 = arith.truncf %28 : vector<2x8x128xf32> to vector<2x8x128xbf16>
    %c0_8 = arith.constant 0 : index
    %c0_9 = arith.constant 0 : index
    %c0_10 = arith.constant 0 : index
    %30 = vector.load %arg5[%c0_8, %c0_9, %c0_10] : memref<2x8x128xbf16, #tpu.memory_space<vmem>>, vector<2x8x128xbf16>
    tpu.vector_store %arg5[%c0_8, %c0_9, %c0_10], %29 {strides = array<i32>} : memref<2x8x128xbf16, #tpu.memory_space<vmem>>, vector<2x8x128xbf16>,
    %cst_11 = arith.constant dense<0.000000e+00> : vector<2x8xf32>
    %31 = vector.multi_reduction <add>, %28, %cst_11 [2] : vector<2x8x128xf32> to vector<2x8xf32>
    %32 = arith.mulf %28, %28 : vector<2x8x128xf32>
    %cst_12 = arith.constant dense<0.000000e+00> : vector<2x8xf32>
    %33 = vector.multi_reduction <add>, %32, %cst_12 [2] : vector<2x8x128xf32> to vector<2x8xf32>
    %34 = tpu.concatenate %31, %33 in 1 : vector<2x8xf32>, vector<2x8xf32> -> vector<2x16xf32>
    %c0_13 = arith.constant 0 : index
    %c0_14 = arith.constant 0 : index
    %c0_15 = arith.constant 0 : index
    %35 = vector.load %arg6[%c0_13, %c0_14, %c0_15] : memref<1x2x16xf32, #tpu.memory_space<vmem>>, vector<1x2x16xf32>
    %36 = vector.shape_cast %35 : vector<1x2x16xf32> to vector<2x16xf32>
    %37 = vector.shape_cast %34 : vector<2x16xf32> to vector<1x2x16xf32>
    tpu.vector_store %arg6[%c0_13, %c0_14, %c0_15], %37 {strides = array<i32>} : memref<1x2x16xf32, #tpu.memory_space<vmem>>, vector<1x2x16xf32>,
    return
  }
  func.func @transform_0(%arg0: i32) -> (i32, i32, i32) {
    %c0_i32 = arith.constant 0 : i32
    %c0_i32_0 = arith.constant 0 : i32
    %c0_i32_1 = arith.constant 0 : i32
    return %c0_i32, %c0_i32_0, %arg0 : i32, i32, i32
  }
  func.func @transform_1(%arg0: i32) -> (i32, i32, i32) {
    %c1_i32 = arith.constant 1 : i32
    %0 = arith.addi %arg0, %c1_i32 : i32
    %c1_i32_0 = arith.constant 1 : i32
    %1 = arith.muli %0, %c1_i32_0 : i32
    %c0_i32 = arith.constant 0 : i32
    %c0_i32_1 = arith.constant 0 : i32
    %c0_i32_2 = arith.constant 0 : i32
    return %c0_i32, %c0_i32_1, %1 : i32, i32, i32
  }
  func.func @transform_2(%arg0: i32) -> (i32, i32) {
    %c0_i32 = arith.constant 0 : i32
    %c0_i32_0 = arith.constant 0 : i32
    %c0_i32_1 = arith.constant 0 : i32
    return %c0_i32, %c0_i32_0 : i32, i32
  }
  func.func @transform_3(%arg0: i32) -> i32 {
    %c0_i32 = arith.constant 0 : i32
    %c0_i32_0 = arith.constant 0 : i32
    return %c0_i32 : i32
  }
  func.func @transform_4(%arg0: i32) -> (i32, i32, i32) {
    %c0_i32 = arith.constant 0 : i32
    %c0_i32_0 = arith.constant 0 : i32
    %c0_i32_1 = arith.constant 0 : i32
    return %c0_i32, %c0_i32_0, %arg0 : i32, i32, i32
  }
  func.func @transform_5(%arg0: i32) -> (i32, i32, i32) {
    %c0_i32 = arith.constant 0 : i32
    %c0_i32_0 = arith.constant 0 : i32
    %c0_i32_1 = arith.constant 0 : i32
    return %arg0, %c0_i32, %c0_i32_0 : i32, i32, i32
  }
}

</mosaic_0001>

<bundles_post_ra>
// kernel: tpu_custom_call.1
= control target key start
LH: loop header
LB: loop body
LE: loop exit
PB: predicated region body
PF: predicated region fallthrough
CT: control target
= control target key end

     0   :  { %s1208_s0 = inlined_call_operand.hbm [shape: f32[2,8,512], index: 0, kind: input, shape index: {}]   ;;  %s1209_s1 = inlined_call_operand.hbm [shape: f32[2,8,512], index: 1, kind: input, shape index: {}]   ;;  %s1210_s2 = inlined_call_operand.vmem [shape: f32[8,3], index: 2, kind: input, shape index: {}]   ;;  %s1211_s3 = inlined_call_operand.<no memory space> [shape: f32[1], index: 3, kind: input, shape index: {}]   ;;  %s1212_s4 = inlined_call_operand.hbm [shape: bf16[2,8,384], index: 4, kind: output, shape index: {0}]   ;;  %s1213_s5 = inlined_call_operand.hbm [shape: f32[3,2,16], index: 5, kind: output, shape index: {1}]  }
   0x1   :  { %1224 = sst [smem:[#allocation16_spill]] %s1208_s0 }
   0x2   :  { %11 = sst [smem:[#allocation2]] %s1211_s3 }
   0x3   :  { %12 = vsyncpa [#allocation4], 0 }
   0x4   :  { %14 = vsyncpa [#allocation4 + $0x1], 0 }
   0x5   :  { %15 = vsyncpa [#allocation7], 0 }
   0x6   :  { %17 = vsyncpa [#allocation7 + $0x1], 0 }
   0x7   :  { %18 = vsyncpa [#allocation5], 0 }
   0x8   :  { %20 = vsyncpa [#allocation5 + $0x1], 0 }
   0x9   :  { %21 = vsyncpa [#allocation10], 0 }
   0xa   :  { %23 = vsyncpa [#allocation10 + $0x1], 0  ;;  %s923_s20 = smov 0   ;;  %s925_s21 = smov 0  }
   0xb   :  { %s927_s22 = smov 0   ;;  %s929_s23 = smov 0  }
   0xc   :  { %s931_s24 = smov 0   ;;  %s933_s25 = smov 0  }
   0xd   :  { %s935_s3 = smov 0  }
   0xe LB: > { %s959_s26 = sadd.s32 4294967295, %s873_s3   ;;  %s577_s27 = sadd.s32 4294967294, %s873_s3   ;;  %s873_s3 = sphi %s935_s3, %s1255_s3   ;;  %s869_s25 = sphi %s933_s25, %s1254_s25   ;;  %s865_s24 = sphi %s931_s24, %s1253_s24   ;;  %s861_s23 = sphi %s929_s23, %s1252_s23   ;;  %s857_s22 = sphi %s927_s22, %s1251_s22   ;;  %s853_s21 = sphi %s925_s21, %s1250_s21   ;;  %s849_s20 = sphi %s923_s20, %s1249_s20  }
   0xf   : > { %s963_s28 = sadd.s32 1, %s873_s3   ;;  %s36_s29 = sadd.s32 1, %s869_s25 }
  0x10   : > { %s33_s30 = ssub.s32 %s873_s3, %s963_s28  ;;  %p43_p0 = scmp.ne.s32.totalorder %s869_s25, %s865_s24 }
  0x11   : > { %p34_p1 = scmp.eq.s32.totalorder %s33_s30, 0  ;;  %p1216_p2 = scmp.eq.s32.totalorder %s873_s3, 0 }
  0x12   : > { %p49_p3 = scmp.ne.s32.totalorder %s865_s24, %s861_s23  ;;  %p1215_p4 = scmp.eq.s32.totalorder %s959_s26, 0 }
  0x13   : > { %s975_s6 = scalar_select %p34_p1, %s869_s25, %s36_s29  }
  0x14   : > { %p979_p5 = por %p1216_p2, %p43_p0  ;;  %p985_p6 = por %p1215_p4, %p49_p3 }
  0x15   : > { %1225 = sst [smem:[#allocation15_spill]] %s975_s6  ;;  %p143_p7 = scmp.eq.s32.totalorder %s959_s26, 2 }
  0x16   : > { %s1227_s8 = scalar_select %p985_p6, 1, 0 }
  0x17   : > { %p149_p8 = scmp.eq.s32.totalorder %s577_s27, 2  ;;  %p1214_p9 = scmp.lt.s32.totalorder %s873_s3, 3 }
  0x18   : > { %p991_p10 = por %p143_p7, %p43_p0  ;;  %s201_s11 = sand.u32 1, %s869_s25  }
  0x19   : > { %p995_p11 = por %p149_p8, %p49_p3  ;;  %s1217_s12 = sshll.u32 %s873_s3, 7 }
  0x1a   : > { %s1228_s9 = scalar_select %p991_p10, 1, 0 }
  0x1b   : > { %s1229_s10 = scalar_select %p995_p11, 1, 0 }
  0x1c   : > { %s580_s13 = sshll.u32 %s201_s11, 4  ;;  %s1230_s0 = sld [smem:[#allocation16_spill]] }
  0x1d   : > { %s205_s17 = scalar_lea.vmem [#allocation3], %s580_s13  ;;  %p1012_p12 = pnand %p1214_p9, %p979_p5 }
  0x1e   : > { %s211_s18 = sshll.u32 %s205_s17, 4  ;;  %s1019_s27 = scalar_lea.sflag [#allocation4], %s201_s11  ;;  %s1016_s18 = int_to_ptr.vmem [resolvable:$true] %s211_s18 }
  0x1f   : > { %p696_p1 = pneg %p1012_p12 }
  0x22   : > { %s1006_s16 = scalar_lea.hbm %s1230_s0, %s1217_s12  ;;  %s699_s7 = scalar_lea.hbm %s1230_s0, 1024 }
  0x23   : > { %s694_s29 = scalar_lea.hbm %s1006_s16, 256  ;;  %p700_p5 = scmp.lt.s32.totalorder %s1006_s16, %s1230_s0 }
  0x24   : > { %p695_p0 = scmp.ne.s32.totalorder %s1006_s16, %s694_s29  ;;  %p701_p8 = scmp.lt.s32.totalorder %s699_s7, %s694_s29 }
  0x26   : > { %p697_p3 = pnand %p696_p1, %p695_p0  ;;  %p702_p9 = por %p701_p8, %p700_p5 }
  0x28   : > { %p698_p7 = pneg %p697_p3 }
  0x2a   : > { %p703_p4 = pnand %p702_p9, %p698_p7 }
  0x2c   : > { %706 = shalt.err (!%p703_p4)
}
  0x2d   : > { %s707_s11 = scalar_lea.vmem %s1016_s18, 256  ;;  %s875_s17 = smov [#allocation3]  }
  0x2e   : > { %p708_p2 = scmp.ne.s32.totalorder %s1016_s18, %s707_s11  ;;  %s712_s12 = sshll.u32 %s875_s17, 4  ;;  %s713_s12 = int_to_ptr.vmem [resolvable:$false] %s712_s12 }
  0x2f   : > { %s714_s30 = scalar_lea.vmem %s713_s12, 512  ;;  %p715_p3 = scmp.lt.s32.totalorder %s1016_s18, %s713_s12 }
  0x30   : > { %p710_p13 = pnand %p708_p2, %p696_p1  ;;  %p716_p11 = scmp.lt.s32.totalorder %s714_s30, %s707_s11 }
  0x32   : > { %p711_p0 = pneg %p710_p13  ;;  %p717_p10 = por %p716_p11, %p715_p3 }
  0x34   : > { %p718_p6 = pnand %p717_p10, %p711_p0 }
  0x36   : > { %721 = shalt.err (!%p718_p6)
}
  0x37   : > { %s1220_s29 = smov 512   ;;  %s1221_s12 = smov 128  }
  0x38   : > { %s1222_s13 = smov 8   ;;  %p240_p2 = scmp.lt.s32.totalorder %s873_s3, 4 }
  0x39   : > { %611 = dma.hbm_to_vmem [thread:$0]  (!%p1012_p12), %s1006_s16, 256, %s1016_s18, %s1019_s27, %s1220_s29, %s1221_s12, %s1222_s13  }
  0x3a   : > { %p1232_p4 = scmp.ge.s32.totalorder %s873_s3, 1  ;;  %s60_s14 = sadd.s32 1, %s963_s28 }
  0x3b   : > { %s64_s15 = sadd.s32 1, %s857_s22  ;;  %s61_s11 = ssub.s32 %s963_s28, %s60_s14 }
  0x3c   : > { %p1046_p6 = pnand %p1232_p4, %p240_p2  ;;  %p71_p9 = scmp.ne.s32.totalorder %s857_s22, %s853_s21 }
  0x3d   : > { %p62_p10 = scmp.eq.s32.totalorder %s61_s11, 0  ;;  %p77_p11 = scmp.ne.s32.totalorder %s853_s21, %s849_s20 }
  0x3e   : > { %s1233_s7 = scalar_select %p1046_p6, 1, 0 }
  0x3f   : > { %p1234_p13 = scmp.eq.s32.totalorder %s873_s3, 0  ;;  %s221_s19 = sand.u32 1, %s857_s22  }
  0x40   : > { %s1061_s17 = scalar_select %p62_p10, %s857_s22, %s64_s15  }
  0x41   : > { %p73_p1 = por %p71_p9, %p1234_p13  ;;  %p1235_p7 = scmp.eq.s32.totalorder %s959_s26, 0 }
  0x42   : > { %s582_s18 = sshll.u32 %s221_s19, 4  ;;  %s1237_s27 = sshll.u32 %s873_s3, 7 }
  0x43   : > { %p1065_p12 = por %p77_p11, %p1235_p7  ;;  %s499_s12 = scalar_lea.hbm %s1209_s1, %s1237_s27 }
  0x44   : > { %s1074_s14 = scalar_lea.hbm %s499_s12, 128  ;;  %s225_s20 = scalar_lea.vmem [#allocation6], %s582_s18 }
  0x45   : > { %s1236_s16 = scalar_select %p1065_p12, 1, 0 }
  0x46   : > { %s232_s11 = sshll.u32 %s225_s20, 4  ;;  %p1238_p5 = scmp.lt.s32.totalorder %s873_s3, 3  ;;  %s1082_s11 = int_to_ptr.vmem [resolvable:$true] %s232_s11 }
  0x47   : > { %s1084_s13 = scalar_lea.sflag [#allocation7], %s221_s19  ;;  %s750_s0 = scalar_lea.hbm %s499_s12, 384 }
  0x48   : > { %p1078_p8 = pnand %p1238_p5, %p73_p1  ;;  %p723_p0 = scmp.ne.s32.totalorder %s1074_s14, %s750_s0 }
  0x49   : > { %s727_s18 = scalar_lea.hbm %s1209_s1, 1024  ;;  %p728_p9 = scmp.lt.s32.totalorder %s1074_s14, %s1209_s1 }
  0x4a   : > { %p724_p3 = pneg %p1078_p8  ;;  %p729_p10 = scmp.lt.s32.totalorder %s727_s18, %s750_s0 }
  0x4c   : > { %p725_p2 = pnand %p724_p3, %p723_p0  ;;  %p730_p11 = por %p729_p10, %p728_p9 }
  0x4e   : > { %p726_p4 = pneg %p725_p2 }
  0x50   : > { %p731_p13 = pnand %p730_p11, %p726_p4 }
  0x52   : > { %734 = shalt.err (!%p731_p13)
}
  0x53   : > { %s735_s12 = scalar_lea.vmem %s1082_s11, 256  ;;  %s879_s19 = smov [#allocation6]  }
  0x54   : > { %p736_p1 = scmp.ne.s32.totalorder %s1082_s11, %s735_s12  ;;  %s740_s6 = sshll.u32 %s879_s19, 4  ;;  %s741_s6 = int_to_ptr.vmem [resolvable:$false] %s740_s6 }
  0x55   : > { %s742_s29 = scalar_lea.vmem %s741_s6, 512  ;;  %p743_p0 = scmp.lt.s32.totalorder %s1082_s11, %s741_s6 }
  0x56   : > { %p738_p7 = pnand %p736_p1, %p724_p3  ;;  %p744_p2 = scmp.lt.s32.totalorder %s742_s29, %s735_s12 }
  0x58   : > { %p739_p5 = pneg %p738_p7  ;;  %p745_p12 = por %p744_p2, %p743_p0 }
  0x5a   : > { %p746_p6 = pnand %p745_p12, %p739_p5 }
  0x5c   : > { %749 = shalt.err (!%p746_p6)
}
  0x5d   : > { %s1240_s0 = smov 8   ;;  %s1241_s27 = smov 128  }
  0x5e   : > { %s1242_s18 = smov 512   ;;  %p1243_p3 = scmp.ne.s32.totalorder %s1233_s7, 0 }
  0x5f   : > { %614 = dma.hbm_to_vmem [thread:$0]  (!%p1078_p8), %s1074_s14, 256, %s1082_s11, %s1084_s13, %s1242_s18, %s1241_s27, %s1240_s0  }
  0x60   : > { %244 = sbr.rel (%p1243_p3) target bundleno = 530 (0x212), region = 36  ;;  %s1110_s30 = sand.u32 (!%p1243_p3), 1, %s865_s24  }
  0x61   : > { %s585_s6 = sshll.u32 (!%p1243_p3), %s1110_s30, 4  ;;  %s247_s20 = scalar_lea.sflag (!%p1243_p3), [#allocation4], %s1110_s30 }
  0x62   : > { %s250_s12 = scalar_lea.vmem (!%p1243_p3), [#allocation3], %s585_s6  ;;  %p1244_p6 = scmp.ne.s32.totalorder (!%p1243_p3), %s1227_s8, 0 }
  0x65   : > { %832 = dma.done.wait (%p1244_p6), %s247_s20, 256  }
  0x66   : > { %834 = vsyncadd (%p1244_p6), %s247_s20, 4294967040  ;;  %s255_s13 = sand.u32 1, %s853_s21   ;;  %p1245_p12 = scmp.ne.s32.totalorder %s1236_s16, 0 }
  0x67   : > { %s586_s14 = sshll.u32 %s255_s13, 4  ;;  %s256_s7 = scalar_lea.sflag [#allocation7], %s255_s13 }
  0x68   : > { %s259_s11 = scalar_lea.vmem [#allocation6], %s586_s14 }
  0x69   : > { %836 = dma.done.wait (%p1245_p12), %s256_s7, 256  }
  0x6a   : > { %838 = vsyncadd (%p1245_p12), %s256_s7, 4294967040  ;;  %v880_v0 = vmov 1   ;;  %v881_v1 = vmov 0   ;;  %v299_v2 = vld [vmem:[%s1210_s2] sm:$0xff]  ;;  %v882_v3 = vmov 2   ;;  %v298_v4 = vld [vmem:[%s250_s12 + $0x8] sm:$0xff] }
  0x6b   : > { %691 = vset.pattern.permute.xlu0 %v880_v0  ;;  %693 = vset.pattern.permute.xlu1 %v881_v1  ;;  %v297_v5 = vld [vmem:[%s250_s12] sm:$0xff]  ;;  %s883_s8 = smov 127   ;;  %v302_v13 = vld [vmem:[%s259_s11 + $0x8] sm:$0xff]  ;;  %s884_s16 = smov 126   ;;  %vm330_vm0 = vcmask 1039360   ;;  %vm357_vm1 = vcmask 1031168  }
  0x6c   : > { %311 = vperm.xlu0 %691, %v299_v2   ;;  %305 = vperm.xlu1 %693, %v299_v2   ;;  %v301_v9 = vld [vmem:[%s259_s11] sm:$0xff]  ;;  %s300_s29 = sld [smem:[#allocation2]]  ;;  %s587_s0 = sshll.u32 %s1110_s30, 3 }
  0x6d   : > { %s288_s27 = scalar_lea.vmem [#allocation8], %s587_s0  ;;  %s591_s6 = sshll.u32 %s959_s26, 6 }
  0x6e   : > { %s435_s18 = sshll.u32 %s288_s27, 4  ;;  %s1133_s13 = scalar_lea.hbm %s1212_s4, %s591_s6  ;;  %s1127_s18 = int_to_ptr.vmem [resolvable:$true] %s435_s18 }
  0x6f   : > { %s418_s14 = scalar_lea.sflag [#allocation5], %s1110_s30  ;;  %s751_s7 = scalar_lea.vmem %s1127_s18, 128 }
  0x70   : > { %692 = vset.pattern.permute.xlu0 %v882_v3  ;;  %p752_p8 = scmp.ne.s32.totalorder %s1127_s18, %s751_s7  ;;  %p1246_p4 = scmp.ne.s32.totalorder %s1228_s9, 0 }
  0x71   : > { %338 = vperm.xlu0 %692, %v299_v2   ;;  %s885_s11 = smov [#allocation8]  }
  0x72   : > { %v366_v30 = vstv %s300_s29  ;;  %p753_p9 = pnand %p752_p8, %p1246_p4  ;;  %s755_s15 = sshll.u32 %s885_s11, 4  ;;  %s756_s15 = int_to_ptr.vmem [resolvable:$false] %s755_s15 }
  0x73   : > { %s757_s19 = scalar_lea.vmem %s756_s15, 256  ;;  %p758_p11 = scmp.lt.s32.totalorder %s1127_s18, %s756_s15 }
  0x74   : > { %p754_p10 = pneg %p753_p9  ;;  %p759_p13 = scmp.lt.s32.totalorder %s757_s19, %s751_s7 }
  0x76   : > { %p760_p1 = por %p759_p13, %p758_p11 }
  0x78   : > { %p761_p7 = pnand %p760_p1, %p754_p10 }
  0xe7   : > { %v312_v6 = vpop.permute.xlu0 %311  ;;  %v306_v18 = vpop.permute.xlu1 %305 }
  0xe8   : > { %v316_v7 = vmul.f32 %v312_v6, %v298_v4  ;;  %v314_v8 = vmul.f32 %v312_v6, %v297_v5  ;;  %v315_v10 = vmul.f32 %v312_v6, %v301_v9  ;;  %v317_v15 = vmul.f32 %v312_v6, %v302_v13 }
  0xe9   : > { %v308_v24 = vmul.f32 %v306_v18, %v297_v5  ;;  %v309_v31 = vmul.f32 %v306_v18, %v298_v4 }
  0xea   : > { %326 = vrot.lane.b32.xlu0 %v316_v7, %s883_s8  ;;  %322 = vrot.lane.b32.xlu1 %v314_v8, %s883_s8 }
  0xec   : > { %v339_v11 = vpop.permute.xlu0 %338 }
  0xed   : > { %v341_v12 = vmul.f32 %v339_v11, %v297_v5  ;;  %v343_v14 = vmul.f32 %v339_v11, %v298_v4  ;;  %v342_v16 = vmul.f32 %v339_v11, %v301_v9  ;;  %v344_v17 = vmul.f32 %v339_v11, %v302_v13 }
  0xee   : > { %324 = vrot.lane.b32.xlu1 %v315_v10, %s883_s8 }
  0xef   : > { %349 = vrot.lane.b32.xlu0 %v341_v12, %s884_s16 }
  0xf2   : > { %328 = vrot.lane.b32.xlu1 %v317_v15, %s883_s8 }
  0xf3   : > { %353 = vrot.lane.b32.xlu0 %v343_v14, %s884_s16 }
  0xf6   : > { %351 = vrot.lane.b32.xlu1 %v342_v16, %s884_s16 }
  0xfa   : > { %355 = vrot.lane.b32.xlu1 %v344_v17, %s884_s16 }
 0x15c   : > { %v323_v19 = vpop.permute.xlu1 %322  ;;  %v327_v21 = vpop.permute.xlu0 %326 }
 0x160   : > { %v325_v20 = vpop.permute.xlu1 %324 }
 0x161   : > { %v331_v23 = vsel %vm330_vm0, %v323_v19, %v325_v20  ;;  %v350_v25 = vpop.permute.xlu0 %349 }
 0x162   : > { %v335_v26 = vadd.f32 %v331_v23, %v308_v24 }
 0x164   : > { %v329_v22 = vpop.permute.xlu1 %328 }
 0x165   : > { %v332_v28 = vsel %vm330_vm0, %v327_v21, %v329_v22  ;;  %v354_v34 = vpop.permute.xlu0 %353 }
 0x166   : > { %v336_v33 = vadd.f32 %v332_v28, %v309_v31 }
 0x168   : > { %v352_v27 = vpop.permute.xlu1 %351 }
 0x169   : > { %v358_v29 = vsel %vm357_vm1, %v350_v25, %v352_v27 }
 0x16a   : > { %v362_v32 = vadd.f32 %v358_v29, %v335_v26 }
 0x16c   : > { %v356_v35 = vpop.permute.xlu1 %355  ;;  %vm364_vm2 = vcmp.gt.f32.partialorder %v362_v32, 0.0  ;;  %v367_v36 = vmul.f32 %v366_v30, %v362_v32 }
 0x16d   : > { %v359_v37 = vsel %vm357_vm1, %v354_v34, %v356_v35 }
 0x16e   : > { %v363_v38 = vadd.f32 %v359_v37, %v336_v33  ;;  %v369_v39 = vsel %vm364_vm2, %v362_v32, %v367_v36 }
 0x16f   : > { %375 = vadd.xlane.f32.xlu0 %v369_v39  ;;  %v379_v41 = vmul.f32 %v369_v39, %v369_v39 }
 0x170   : > { %vm365_vm3 = vcmp.gt.f32.partialorder %v363_v38, 0.0  ;;  %v368_v40 = vmul.f32 %v366_v30, %v363_v38 }
 0x172   : > { %v370_v42 = vsel %vm365_vm3, %v363_v38, %v368_v40 }
 0x173   : > { %377 = vadd.xlane.f32.xlu1 %v370_v42  ;;  %v598_v43 = vpack.c.bf16 %v370_v42, %v369_v39  ;;  %381 = vadd.xlane.f32.xlu0 %v379_v41  ;;  %v380_v44 = vmul.f32 %v370_v42, %v370_v42 }
 0x175   : > { %599 = vst [vmem:[%s288_s27] sm:$0xff] %v598_v43  }
 0x177   : > { %383 = vadd.xlane.f32.xlu0 %v380_v44 }
 0x178   : > { %764 = shalt.err (!%p761_p7)
}
 0x179   : > { %s765_s8 = scalar_lea.hbm %s1133_s13, 128  ;;  %s769_s0 = scalar_lea.hbm %s1212_s4, 384 }
 0x17a   : > { %p766_p5 = scmp.ne.s32.totalorder %s1133_s13, %s765_s8  ;;  %p770_p3 = scmp.lt.s32.totalorder %s1133_s13, %s1212_s4 }
 0x17b   : > { %p771_p6 = scmp.lt.s32.totalorder %s769_s0, %s765_s8 }
 0x17c   : > { %p767_p0 = pnand %p766_p5, %p1246_p4 }
 0x17d   : > { %p772_p12 = por %p771_p6, %p770_p3 }
 0x17e   : > { %p768_p2 = pneg %p767_p0 }
 0x180   : > { %p773_p8 = pnand %p772_p12, %p768_p2 }
 0x182   : > { %776 = shalt.err (!%p773_p8)
}
 0x183   : > { %s886_s20 = smov 64   ;;  %s887_s12 = smov 192   ;;  %v387_v45 = vlaneseq  ;;  %vm397_vm4 = vcmask 1041409   ;;  %vm413_vm5 = vcmask 64512   ;;  %vm415_vm6 = vcmask 123904  }
 0x184   : > { %s888_s7 = smov 4   ;;  %s588_s11 = sshll.u32 %s1110_s30, 1 }
 0x185   : > { %604 = dma.vmem_to_hbm [thread:$0]  (%p1246_p4), %s1127_s18, 128, %s1133_s13, %s418_s14, %s886_s20, %s887_s12, %s888_s7   ;;  %v388_v46 = vand.u32 127, %v387_v45  ;;  %v390_v48 = vshrl.u32 %v387_v45, 7 }
 0x186   : > { %s592_s15 = sshll.u32 %s959_s26, 5  ;;  %s295_s19 = scalar_lea.vmem [#allocation9], %s588_s11 }
 0x187   : > { %v402_v49 = vadd.s32 4294967288, %v388_v46  ;;  %v391_v52 = vsub.s32 %v388_v46, %v390_v48  ;;  %s451_s8 = sshll.u32 %s295_s19, 4  ;;  %s1163_s14 = scalar_lea.hbm %s1213_s5, %s592_s15  ;;  %s452_s8 = int_to_ptr.vmem [resolvable:$true] %s451_s8 }
 0x188   : > { %s423_s16 = scalar_lea.sflag [#allocation10], %s1110_s30  ;;  %s777_s26 = scalar_lea.vmem %s452_s8, 32 }
 0x189   : > { %v405_v53 = vsub.s32 %v402_v49, %v390_v48  ;;  %p778_p9 = scmp.ne.s32.totalorder %s452_s8, %s777_s26  ;;  %s889_s29 = smov [#allocation9]  }
 0x18a   : > { %s781_s0 = sshll.u32 %s889_s29, 4  ;;  %s782_s0 = int_to_ptr.vmem [resolvable:$false] %s781_s0 }
 0x18b   : > { %p779_p10 = pnand %p778_p9, %p1246_p4  ;;  %s783_s27 = scalar_lea.vmem %s782_s0, 64 }
 0x18c   : > { %p784_p13 = scmp.lt.s32.totalorder %s452_s8, %s782_s0  ;;  %p785_p1 = scmp.lt.s32.totalorder %s783_s27, %s777_s26 }
 0x18d   : > { %p780_p11 = pneg %p779_p10 }
 0x18e   : > { %p786_p7 = por %p785_p1, %p784_p13 }
 0x190   : > { %p787_p5 = pnand %p786_p7, %p780_p11 }
 0x1f8   : > { %v376_v47 = vpop.xlane.xlu0 %375 }
 0x1f9   : > { %v392_v56 = vrot.slane %v376_v47, %v391_v52 }
 0x1fc   : > { %v378_v50 = vpop.xlane.xlu1 %377  ;;  %v382_v51 = vpop.xlane.xlu0 %381 }
 0x1fd   : > { %v396_v54 = vrot.slane %v378_v50, %v391_v52  ;;  %v406_v57 = vrot.slane %v382_v51, %v405_v53 }
 0x1ff   : > { %v398_v59 = vsel %vm397_vm4, %v396_v54, %v392_v56 }
 0x200   : > { %v384_v55 = vpop.xlane.xlu0 %383 }
 0x201   : > { %v410_v58 = vrot.slane %v384_v55, %v405_v53 }
 0x203   : > { %v411_v60 = vsel %vm397_vm4, %v410_v58, %v406_v57 }
 0x204   : > { %v414_v61 = vsel %vm413_vm5, %v398_v59, %v411_v60 }
 0x205   : > { %416 = vst.msk [vmem:[%s295_s19] sm:$0x3] %vm415_vm6, %v414_v61 }
 0x206   : > { %790 = shalt.err (!%p787_p5)
}
 0x207   : > { %s791_s6 = scalar_lea.hbm %s1163_s14, 32  ;;  %s795_s12 = scalar_lea.hbm %s1213_s5, 96 }
 0x208   : > { %p792_p0 = scmp.ne.s32.totalorder %s1163_s14, %s791_s6  ;;  %p796_p6 = scmp.lt.s32.totalorder %s1163_s14, %s1213_s5 }
 0x209   : > { %p797_p12 = scmp.lt.s32.totalorder %s795_s12, %s791_s6 }
 0x20a   : > { %p793_p2 = pnand %p792_p0, %p1246_p4 }
 0x20b   : > { %p798_p8 = por %p797_p12, %p796_p6 }
 0x20c   : > { %p794_p3 = pneg %p793_p2 }
 0x20e   : > { %p799_p9 = pnand %p798_p8, %p794_p3 }
 0x210   : > { %802 = shalt.err (!%p799_p9)
}
 0x211   : > { %605 = dma.vmem_to_hbm [thread:$0]  (%p1246_p4), %s452_s8, 32, %s1163_s14, %s423_s16  }
 0x212 PF: > { %p623_p10 = scmp.ge.s32.totalorder %s873_s3, 2  ;;  %s463_s15 = sand.u32 1, %s861_s23  }
 0x213   : > { %p1247_p11 = scmp.ne.s32.totalorder %s1229_s10, 0  ;;  %s464_s19 = scalar_lea.sflag [#allocation5], %s463_s15 }
 0x215   : > { %p616_p13 = pnand %p623_p10, %p1247_p11 }
 0x217   : > { %p617_p1 = pneg %p616_p13 }
 0x219   : > { %840 = dma.done.wait (%p617_p1), %s464_s19, 128  }
 0x21a   : > { %842 = vsyncadd (%p617_p1), %s464_s19, 4294967168  ;;  %s473_s18 = scalar_lea.sflag [#allocation10], %s463_s15 }
 0x21b   : > { %844 = dma.done.wait (%p617_p1), %s473_s18, 32  }
 0x21c   : > { %846 = vsyncadd (%p617_p1), %s473_s18, 4294967264  ;;  %s1248_s9 = sld [smem:[#allocation15_spill]]  ;;  %p26_p4 = scmp.ge.s32.totalorder %s963_s28, 5  }
 0x21d   : > { %s1249_s20 = smov %s853_s21  ;;  %s1250_s21 = smov %s857_s22 }
 0x21e   : > { %s1251_s22 = smov %s1061_s17  ;;  %s1252_s23 = smov %s865_s24 }
 0x21f   : > { %s1253_s24 = smov %s869_s25  ;;  %s1255_s3 = smov %s963_s28 }
 0x220   :  { %28 = sbr.rel (!%p26_p4) target bundleno = 14 (0xe), region = 111 }
 0x222   : > { %s1254_s25 = smov %s1248_s9 }
 0x225   :  { %478 = vsyncpa [#allocation4], 1 }
 0x226   :  { %480 = vsyncpa [#allocation4 + $0x1], 1 }
 0x227   :  { %481 = vsyncpa [#allocation7], 1 }
 0x228   :  { %483 = vsyncpa [#allocation7 + $0x1], 1 }
 0x229   :  { %484 = vsyncpa [#allocation5], 1 }
 0x22a   :  { %486 = vsyncpa [#allocation5 + $0x1], 1 }
 0x22b   :  { %487 = vsyncpa [#allocation10], 1 }
 0x22c   :  { %489 = vsyncpa [#allocation10 + $0x1], 1 }

</bundles_post_ra>
